<compile_context>
chip_gen: v7x
topology: tpu7x:2x2x1
jax: 0.10.0
libtpu: 0.0.40
codegen_flags: <defaults>
</compile_context>

<pallas_src>
import functools

import jax
import jax.numpy as jnp
import numpy as np
from jax.experimental import pallas as pl
from jax.experimental.pallas import tpu as pltpu


def _shift_kernel(shift_ref, wsel_ref, x_ref, o_ref, xpad_ref, *,
                  pad, imgs_per_step, n_imgs, c, h, w):
    """One grid step processes `imgs_per_step` images resident in VMEM."""
    step = pl.program_id(0)
    fuse = (h % 8 == 0)  # (C, H, W) -> (C*H, W) reshape is a free relayout iff H % 8 == 0

    for b in range(imgs_per_step):  # small static unroll; iterations are independent
        img = jnp.minimum(step * imgs_per_step + b, n_imgs - 1)
        sx = jnp.clip(shift_ref[2 * img], 0, 2 * pad)      # width shift
        sy = jnp.clip(shift_ref[2 * img + 1], 0, 2 * pad)  # height shift

        # f32 internally: exact for the 0/1 selection and avoids packed-sublane
        # complications when dynamically slicing the scratch at odd row offsets.
        xb = x_ref[b].astype(jnp.float32)                  # (C, H, W)

        # Replicate-pad rows into the VMEM scratch (C, H + 2*pad, W).
        xpad_ref[:, pad:pad + h, :] = xb
        if pad > 0:
            xpad_ref[:, :pad, :] = jnp.broadcast_to(xb[:, :1, :], (c, pad, w))
            xpad_ref[:, pad + h:, :] = jnp.broadcast_to(xb[:, h - 1:, :], (c, pad, w))

        # Vertical shift = dynamic sublane slice: pure copy, no compute.
        rows = xpad_ref[:, pl.ds(sy, h), :]                # (C, H, W)

        # Horizontal shift = exact one-hot selection matmul (replicate clamp folded
        # into the LUT), fused over channels.
        sel = wsel_ref[sx]                                 # (W, W) 0/1 matrix
        if fuse:
            out = jnp.dot(rows.reshape(c * h, w), sel,
                          preferred_element_type=jnp.float32,
                          precision=jax.lax.Precision.HIGHEST)
            o_ref[b] = out.reshape(c, h, w).astype(o_ref.dtype)
        else:
            for cc in range(c):
                o_ref[b, cc] = jnp.dot(rows[cc], sel,
                                       preferred_element_type=jnp.float32,
                                       precision=jax.lax.Precision.HIGHEST
                                       ).astype(o_ref.dtype)


def _make_col_select_lut(w, pad, dtype=jnp.float32):
    """(2*pad+1, W, W) one-hot matrices: lut[s, k, j] = 1 iff k == clamp(j + s - pad, 0, W-1)."""
    s = jnp.arange(2 * pad + 1, dtype=jnp.int32)[:, None, None]
    k = jnp.arange(w, dtype=jnp.int32)[None, :, None]
    j = jnp.arange(w, dtype=jnp.int32)[None, None, :]
    src = jnp.clip(j + s - pad, 0, w - 1)
    return (k == src).astype(dtype)


def random_shifts_aug(x, key, pad, images_per_step=8):
    n, c, h, w = x.shape
    assert h == w
    hp = h + 2 * pad

    # torch.randint(0, 2*pad+1, (n,1,1,2)): per-image integer shifts.
    # Column 0 = sx (width), column 1 = sy (height).  Flattened 1D -> tiny SMEM footprint.
    shift = jax.random.randint(key, (n, 2), 0, 2 * pad + 1, dtype=jnp.int32)
    shift_flat = shift.reshape(-1)

    wsel = _make_col_select_lut(w, pad, jnp.float32)

    # Images per grid step: amortize per-step overhead while keeping double-buffered
    # in+out blocks comfortably inside VMEM (v7x: 64 MiB physical / 32 MiB scoped default).
    bytes_per_img = 2 * c * h * w * x.dtype.itemsize        # in + out block contribution
    vmem_budget = 8 * 1024 * 1024
    b_imgs = max(1, min(n, images_per_step, vmem_budget // max(bytes_per_img, 1)))
    while n % b_imgs:                                       # keep blocks exactly dividing N
        b_imgs -= 1
    steps = n // b_imgs

    kernel = functools.partial(_shift_kernel, pad=pad, imgs_per_step=b_imgs,
                               n_imgs=n, c=c, h=h, w=w)

    return pl.pallas_call(
        kernel,
        out_shape=jax.ShapeDtypeStruct((n, c, h, w), x.dtype),
        grid_spec=pltpu.PrefetchScalarGridSpec(
            num_scalar_prefetch=1,
            grid=(steps,),
            in_specs=[
                # Selection LUT: constant block index -> fetched once, stays resident.
                pl.BlockSpec((2 * pad + 1, w, w), lambda i, s: (0, 0, 0)),
                pl.BlockSpec((b_imgs, c, h, w), lambda i, s: (i, 0, 0, 0)),
            ],
            out_specs=pl.BlockSpec((b_imgs, c, h, w), lambda i, s: (i, 0, 0, 0)),
            scratch_shapes=[pltpu.VMEM((c, hp, w), jnp.float32)],
        ),
        compiler_params=pltpu.CompilerParams(dimension_semantics=("parallel",)),
    )(shift_flat, wsel, x)


def _reference(x, shift, pad):
    # Exact semantics of the torch module: integer crop of the replicate-padded image.
    n, c, h, w = x.shape
    xp = jnp.pad(x, ((0, 0), (0, 0), (pad, pad), (pad, pad)), mode="edge")
    outs = []
    for i in range(n):
        sx, sy = int(shift[i, 0]), int(shift[i, 1])
        outs.append(xp[i, :, sy:sy + h, sx:sx + w])
    return jnp.stack(outs)


if __name__ == "__main__":
    pad = 4
    key = jax.random.PRNGKey(0)
    kx, ks = jax.random.split(key)
    x = jax.random.normal(kx, (2, 4, 16, 16), dtype=jnp.float32)

    out = jax.block_until_ready(random_shifts_aug(x, ks, pad))

    # Self-check against the pure-JAX integer-shift reference (bit-exact selection).
    shift = jax.random.randint(ks, (2, 2), 0, 2 * pad + 1, dtype=jnp.int32)
    ref = _reference(x, np.asarray(shift), pad)
    assert out.shape == x.shape and out.dtype == x.dtype
    np.testing.assert_allclose(np.asarray(out), np.asarray(ref), atol=1e-6, rtol=1e-6)
    print("KERNEL_OK")
</pallas_src>

<mosaic_0001>
module attributes {stable_mosaic.version = 11 : i64} {
  func.func @_shift_kernel(%arg0: i32, %arg1: memref<4xi32, #tpu.memory_space<smem>>, %arg2: memref<9x16x16xf32, #tpu.memory_space<vmem>>, %arg3: memref<2x4x16x16xf32, #tpu.memory_space<vmem>>, %arg4: memref<2x4x16x16xf32, #tpu.memory_space<vmem>>, %arg5: memref<4x24x16xf32, #tpu.memory_space<vmem>>) attributes {dimension_semantics = [#tpu.dimension_semantics<parallel>], iteration_bounds = array<i64: 1>, scalar_prefetch = 1 : i64, scratch_operands = 1 : i64, tpu.core_type = #tpu.core_type<tc>, window_params = [{pipeline_mode = #tpu.pipeline_mode<synchronous>, transform_indices = @transform_0, window_bounds = array<i64: 9, 16, 16>}, {transform_indices = @transform_1, window_bounds = array<i64: 2, 4, 16, 16>}, {transform_indices = @transform_2, window_bounds = array<i64: 2, 4, 16, 16>}]} {
    %c2_i32 = arith.constant 2 : i32
    %0 = arith.muli %arg0, %c2_i32 : i32
    %c0_i32 = arith.constant 0 : i32
    %1 = arith.addi %0, %c0_i32 : i32
    %c1_i32 = arith.constant 1 : i32
    %2 = arith.minsi %1, %c1_i32 : i32
    %c2_i32_0 = arith.constant 2 : i32
    %3 = arith.muli %c2_i32_0, %2 : i32
    %4 = arith.index_cast %3 : i32 to index
    %5 = memref.load %arg1[%4] : memref<4xi32, #tpu.memory_space<smem>>
    %c0_i32_1 = arith.constant 0 : i32
    %c8_i32 = arith.constant 8 : i32
    %6 = arith.maxsi %c0_i32_1, %5 : i32
    %7 = arith.minsi %c8_i32, %6 : i32
    %c2_i32_2 = arith.constant 2 : i32
    %8 = arith.muli %c2_i32_2, %2 : i32
    %c1_i32_3 = arith.constant 1 : i32
    %9 = arith.addi %8, %c1_i32_3 : i32
    %10 = arith.index_cast %9 : i32 to index
    %11 = memref.load %arg1[%10] : memref<4xi32, #tpu.memory_space<smem>>
    %c0_i32_4 = arith.constant 0 : i32
    %c8_i32_5 = arith.constant 8 : i32
    %12 = arith.maxsi %c0_i32_4, %11 : i32
    %13 = arith.minsi %c8_i32_5, %12 : i32
    %c0 = arith.constant 0 : index
    %c0_6 = arith.constant 0 : index
    %c0_7 = arith.constant 0 : index
    %c0_8 = arith.constant 0 : index
    %14 = vector.load %arg3[%c0, %c0_6, %c0_7, %c0_8] : memref<2x4x16x16xf32, #tpu.memory_space<vmem>>, vector<1x4x16x16xf32>
    %15 = vector.shape_cast %14 : vector<1x4x16x16xf32> to vector<4x16x16xf32>
    %c0_9 = arith.constant 0 : index
    %c4 = arith.constant 4 : index
    %c0_10 = arith.constant 0 : index
    %16 = vector.load %arg5[%c0_9, %c4, %c0_10] : memref<4x24x16xf32, #tpu.memory_space<vmem>>, vector<4x16x16xf32>
    tpu.vector_store %arg5[%c0_9, %c4, %c0_10], %15 {strides = array<i32>} : memref<4x24x16xf32, #tpu.memory_space<vmem>>, vector<4x16x16xf32>,
    %17 = vector.extract_strided_slice %15 {offsets = [0, 0, 0], sizes = [4, 1, 16], strides = [1, 1, 1]} : vector<4x16x16xf32> to vector<4x1x16xf32>
    %18 = vector.shape_cast %17 : vector<4x1x16xf32> to vector<4x1x16xf32>
    %19 = vector.broadcast %18 : vector<4x1x16xf32> to vector<4x4x16xf32>
    %c0_11 = arith.constant 0 : index
    %c0_12 = arith.constant 0 : index
    %c0_13 = arith.constant 0 : index
    %20 = vector.load %arg5[%c0_11, %c0_12, %c0_13] : memref<4x24x16xf32, #tpu.memory_space<vmem>>, vector<4x4x16xf32>
    tpu.vector_store %arg5[%c0_11, %c0_12, %c0_13], %19 {strides = array<i32>} : memref<4x24x16xf32, #tpu.memory_space<vmem>>, vector<4x4x16xf32>,
    %21 = vector.extract_strided_slice %15 {offsets = [0, 15, 0], sizes = [4, 1, 16], strides = [1, 1, 1]} : vector<4x16x16xf32> to vector<4x1x16xf32>
    %22 = vector.shape_cast %21 : vector<4x1x16xf32> to vector<4x1x16xf32>
    %23 = vector.broadcast %22 : vector<4x1x16xf32> to vector<4x4x16xf32>
    %c0_14 = arith.constant 0 : index
    %c20 = arith.constant 20 : index
    %c0_15 = arith.constant 0 : index
    %24 = vector.load %arg5[%c0_14, %c20, %c0_15] : memref<4x24x16xf32, #tpu.memory_space<vmem>>, vector<4x4x16xf32>
    tpu.vector_store %arg5[%c0_14, %c20, %c0_15], %23 {strides = array<i32>} : memref<4x24x16xf32, #tpu.memory_space<vmem>>, vector<4x4x16xf32>,
    %c0_16 = arith.constant 0 : index
    %25 = arith.index_cast %13 : i32 to index
    %c0_17 = arith.constant 0 : index
    %26 = vector.load %arg5[%c0_16, %25, %c0_17] : memref<4x24x16xf32, #tpu.memory_space<vmem>>, vector<4x16x16xf32>
    %27 = arith.index_cast %7 : i32 to index
    %c0_18 = arith.constant 0 : index
    %c0_19 = arith.constant 0 : index
    %28 = vector.load %arg2[%27, %c0_18, %c0_19] : memref<9x16x16xf32, #tpu.memory_space<vmem>>, vector<1x16x16xf32>
    %29 = vector.shape_cast %28 : vector<1x16x16xf32> to vector<16x16xf32>
    %30 = vector.shape_cast %26 : vector<4x16x16xf32> to vector<64x16xf32>
    %cst = arith.constant dense<0.000000e+00> : vector<64x16xf32>
    %31 = tpu.matmul %30, %29, %cst {dimension_numbers = #tpu.dot_dimension_numbers<[1], [0], [0], [1], [0, 0, 1, 1], [], []>, precision = #tpu.contract_precision<fp32>} : vector<64x16xf32>, vector<16x16xf32>, vector<64x16xf32> -> vector<64x16xf32>
    %32 = vector.shape_cast %31 : vector<64x16xf32> to vector<4x16x16xf32>
    %c0_20 = arith.constant 0 : index
    %c0_21 = arith.constant 0 : index
    %c0_22 = arith.constant 0 : index
    %c0_23 = arith.constant 0 : index
    %33 = vector.load %arg4[%c0_20, %c0_21, %c0_22, %c0_23] : memref<2x4x16x16xf32, #tpu.memory_space<vmem>>, vector<1x4x16x16xf32>
    %34 = vector.shape_cast %33 : vector<1x4x16x16xf32> to vector<4x16x16xf32>
    %35 = vector.shape_cast %32 : vector<4x16x16xf32> to vector<1x4x16x16xf32>
    tpu.vector_store %arg4[%c0_20, %c0_21, %c0_22, %c0_23], %35 {strides = array<i32>} : memref<2x4x16x16xf32, #tpu.memory_space<vmem>>, vector<1x4x16x16xf32>,
    %c2_i32_24 = arith.constant 2 : i32
    %36 = arith.muli %arg0, %c2_i32_24 : i32
    %c1_i32_25 = arith.constant 1 : i32
    %37 = arith.addi %36, %c1_i32_25 : i32
    %c1_i32_26 = arith.constant 1 : i32
    %38 = arith.minsi %37, %c1_i32_26 : i32
    %c2_i32_27 = arith.constant 2 : i32
    %39 = arith.muli %c2_i32_27, %38 : i32
    %40 = arith.index_cast %39 : i32 to index
    %41 = memref.load %arg1[%40] : memref<4xi32, #tpu.memory_space<smem>>
    %c0_i32_28 = arith.constant 0 : i32
    %c8_i32_29 = arith.constant 8 : i32
    %42 = arith.maxsi %c0_i32_28, %41 : i32
    %43 = arith.minsi %c8_i32_29, %42 : i32
    %c2_i32_30 = arith.constant 2 : i32
    %44 = arith.muli %c2_i32_30, %38 : i32
    %c1_i32_31 = arith.constant 1 : i32
    %45 = arith.addi %44, %c1_i32_31 : i32
    %46 = arith.index_cast %45 : i32 to index
    %47 = memref.load %arg1[%46] : memref<4xi32, #tpu.memory_space<smem>>
    %c0_i32_32 = arith.constant 0 : i32
    %c8_i32_33 = arith.constant 8 : i32
    %48 = arith.maxsi %c0_i32_32, %47 : i32
    %49 = arith.minsi %c8_i32_33, %48 : i32
    %c1 = arith.constant 1 : index
    %c0_34 = arith.constant 0 : index
    %c0_35 = arith.constant 0 : index
    %c0_36 = arith.constant 0 : index
    %50 = vector.load %arg3[%c1, %c0_34, %c0_35, %c0_36] : memref<2x4x16x16xf32, #tpu.memory_space<vmem>>, vector<1x4x16x16xf32>
    %51 = vector.shape_cast %50 : vector<1x4x16x16xf32> to vector<4x16x16xf32>
    %c0_37 = arith.constant 0 : index
    %c4_38 = arith.constant 4 : index
    %c0_39 = arith.constant 0 : index
    %52 = vector.load %arg5[%c0_37, %c4_38, %c0_39] : memref<4x24x16xf32, #tpu.memory_space<vmem>>, vector<4x16x16xf32>
    tpu.vector_store %arg5[%c0_37, %c4_38, %c0_39], %51 {strides = array<i32>} : memref<4x24x16xf32, #tpu.memory_space<vmem>>, vector<4x16x16xf32>,
    %53 = vector.extract_strided_slice %51 {offsets = [0, 0, 0], sizes = [4, 1, 16], strides = [1, 1, 1]} : vector<4x16x16xf32> to vector<4x1x16xf32>
    %54 = vector.shape_cast %53 : vector<4x1x16xf32> to vector<4x1x16xf32>
    %55 = vector.broadcast %54 : vector<4x1x16xf32> to vector<4x4x16xf32>
    %c0_40 = arith.constant 0 : index
    %c0_41 = arith.constant 0 : index
    %c0_42 = arith.constant 0 : index
    %56 = vector.load %arg5[%c0_40, %c0_41, %c0_42] : memref<4x24x16xf32, #tpu.memory_space<vmem>>, vector<4x4x16xf32>
    tpu.vector_store %arg5[%c0_40, %c0_41, %c0_42], %55 {strides = array<i32>} : memref<4x24x16xf32, #tpu.memory_space<vmem>>, vector<4x4x16xf32>,
    %57 = vector.extract_strided_slice %51 {offsets = [0, 15, 0], sizes = [4, 1, 16], strides = [1, 1, 1]} : vector<4x16x16xf32> to vector<4x1x16xf32>
    %58 = vector.shape_cast %57 : vector<4x1x16xf32> to vector<4x1x16xf32>
    %59 = vector.broadcast %58 : vector<4x1x16xf32> to vector<4x4x16xf32>
    %c0_43 = arith.constant 0 : index
    %c20_44 = arith.constant 20 : index
    %c0_45 = arith.constant 0 : index
    %60 = vector.load %arg5[%c0_43, %c20_44, %c0_45] : memref<4x24x16xf32, #tpu.memory_space<vmem>>, vector<4x4x16xf32>
    tpu.vector_store %arg5[%c0_43, %c20_44, %c0_45], %59 {strides = array<i32>} : memref<4x24x16xf32, #tpu.memory_space<vmem>>, vector<4x4x16xf32>,
    %c0_46 = arith.constant 0 : index
    %61 = arith.index_cast %49 : i32 to index
    %c0_47 = arith.constant 0 : index
    %62 = vector.load %arg5[%c0_46, %61, %c0_47] : memref<4x24x16xf32, #tpu.memory_space<vmem>>, vector<4x16x16xf32>
    %63 = arith.index_cast %43 : i32 to index
    %c0_48 = arith.constant 0 : index
    %c0_49 = arith.constant 0 : index
    %64 = vector.load %arg2[%63, %c0_48, %c0_49] : memref<9x16x16xf32, #tpu.memory_space<vmem>>, vector<1x16x16xf32>
    %65 = vector.shape_cast %64 : vector<1x16x16xf32> to vector<16x16xf32>
    %66 = vector.shape_cast %62 : vector<4x16x16xf32> to vector<64x16xf32>
    %cst_50 = arith.constant dense<0.000000e+00> : vector<64x16xf32>
    %67 = tpu.matmul %66, %65, %cst_50 {dimension_numbers = #tpu.dot_dimension_numbers<[1], [0], [0], [1], [0, 0, 1, 1], [], []>, precision = #tpu.contract_precision<fp32>} : vector<64x16xf32>, vector<16x16xf32>, vector<64x16xf32> -> vector<64x16xf32>
    %68 = vector.shape_cast %67 : vector<64x16xf32> to vector<4x16x16xf32>
    %c1_51 = arith.constant 1 : index
    %c0_52 = arith.constant 0 : index
    %c0_53 = arith.constant 0 : index
    %c0_54 = arith.constant 0 : index
    %69 = vector.load %arg4[%c1_51, %c0_52, %c0_53, %c0_54] : memref<2x4x16x16xf32, #tpu.memory_space<vmem>>, vector<1x4x16x16xf32>
    %70 = vector.shape_cast %69 : vector<1x4x16x16xf32> to vector<4x16x16xf32>
    %71 = vector.shape_cast %68 : vector<4x16x16xf32> to vector<1x4x16x16xf32>
    tpu.vector_store %arg4[%c1_51, %c0_52, %c0_53, %c0_54], %71 {strides = array<i32>} : memref<2x4x16x16xf32, #tpu.memory_space<vmem>>, vector<1x4x16x16xf32>,
    return
  }
  func.func @transform_0(%arg0: i32, %arg1: memref<4xi32, #tpu.memory_space<smem>>) -> (i32, i32, i32) {
    %c0_i32 = arith.constant 0 : i32
    %c0_i32_0 = arith.constant 0 : i32
    %c0_i32_1 = arith.constant 0 : i32
    %c0_i32_2 = arith.constant 0 : i32
    return %c0_i32, %c0_i32_0, %c0_i32_1 : i32, i32, i32
  }
  func.func @transform_1(%arg0: i32, %arg1: memref<4xi32, #tpu.memory_space<smem>>) -> (i32, i32, i32, i32) {
    %c0_i32 = arith.constant 0 : i32
    %c0_i32_0 = arith.constant 0 : i32
    %c0_i32_1 = arith.constant 0 : i32
    %c0_i32_2 = arith.constant 0 : i32
    return %arg0, %c0_i32, %c0_i32_0, %c0_i32_1 : i32, i32, i32, i32
  }
  func.func @transform_2(%arg0: i32, %arg1: memref<4xi32, #tpu.memory_space<smem>>) -> (i32, i32, i32, i32) {
    %c0_i32 = arith.constant 0 : i32
    %c0_i32_0 = arith.constant 0 : i32
    %c0_i32_1 = arith.constant 0 : i32
    %c0_i32_2 = arith.constant 0 : i32
    return %arg0, %c0_i32, %c0_i32_0, %c0_i32_1 : i32, i32, i32, i32
  }
}

</mosaic_0001>

<bundles_post_ra>
// kernel: tpu_custom_call.1
= control target key start
LH: loop header
LB: loop body
LE: loop exit
PB: predicated region body
PF: predicated region fallthrough
CT: control target
= control target key end

     0   :  { %s2948_s0 = inlined_call_operand.hbm [shape: s32[4], index: 0, kind: input, shape index: {}]   ;;  %s2949_s1 = inlined_call_operand.hbm [shape: f32[9,16,16], index: 1, kind: input, shape index: {}]   ;;  %s2950_s2 = inlined_call_operand.hbm [shape: f32[2,4,16,16], index: 2, kind: input, shape index: {}]   ;;  %s2951_s3 = inlined_call_operand.hbm [shape: f32[2,4,16,16], index: 3, kind: output, shape index: {}]  }
   0x1   :  { %s2304_s14 = scalar_lea.hbm %s2948_s0, 16 }
   0x2   :  { %p2305_p0 = scmp.ne.s32.totalorder %s2948_s0, %s2304_s14  ;;  %p2308_p1 = scmp.lt.u32.totalorder %s2304_s14, %s2948_s0 }
   0x4   :  { %p2310_p2 = pnand %p2308_p1, %p2305_p0 }
   0x6   :  { %2313 = shalt.err (!%p2310_p2)  }
   0x7   :  { %s2388_s19 = smov [#allocation4]  }
   0x8   :  { %9 = dma.hbm_to_smem %s2948_s0, 16, %s2388_s19, [#allocation3] }
   0x9   :  { %2380 = dma.done.wait [#allocation3], 16 }
   0xa   :  { %2381 = vsyncadd [#allocation3], 4294967280 }
   0xb   :  { %11 = sfence }
   0xc   :  { %12 = vsyncpa [#allocation6], 0 }
   0xd   :  { %13 = vsyncpa [#allocation9], 0 }
   0xe   :  { %14 = vsyncpa [#allocation7], 0  ;;  %s2389_s22 = smov [#allocation5]   ;;  %s2314_s26 = scalar_lea.hbm %s2949_s1, 2304 }
   0xf   :  { %s20_s23 = sshll.u32 %s2389_s22, 4  ;;  %p2315_p3 = scmp.ne.s32.totalorder %s2949_s1, %s2314_s26  ;;  %s21_s23 = int_to_ptr.vmem [resolvable:$true] %s20_s23 }
  0x10   :  { %p2318_p4 = scmp.lt.u32.totalorder %s2314_s26, %s2949_s1 }
  0x12   :  { %p2320_p5 = pnand %p2318_p4, %p2315_p3 }
  0x14   :  { %2323 = shalt.err (!%p2320_p5)
}
  0x15   :  { %s2324_s0 = scalar_lea.vmem %s21_s23, 2304  ;;  %p2329_p7 = scmp.lt.s32.totalorder %s21_s23, %s21_s23 }
  0x16   :  { %p2325_p6 = scmp.ne.s32.totalorder %s21_s23, %s2324_s0  ;;  %p2330_p8 = scmp.lt.s32.totalorder %s2324_s0, %s2324_s0 }
  0x18   :  { %p2331_p9 = por %p2330_p8, %p2329_p7 }
  0x1a   :  { %p2332_p10 = pnand %p2331_p9, %p2325_p6 }
  0x1c   :  { %2335 = shalt.err (!%p2332_p10)
}
  0x1d   :  { %s2390_s4 = smov 128   ;;  %s2391_s5 = smov 8  }
  0x1e   :  { %26 = dma.hbm_to_vmem [thread:$0]  %s2949_s1, 2304, %s21_s23, [#allocation6], %s2390_s4, %s2390_s4, %s2391_s5  }
  0x1f   :  { %s2392_s8 = smov [#allocation8]   ;;  %s2336_s12 = scalar_lea.hbm %s2950_s2, 2048 }
  0x20   :  { %s32_s9 = sshll.u32 %s2392_s8, 4  ;;  %p2337_p11 = scmp.ne.s32.totalorder %s2950_s2, %s2336_s12  ;;  %s33_s9 = int_to_ptr.vmem [resolvable:$true] %s32_s9 }
  0x21   :  { %p2340_p12 = scmp.lt.u32.totalorder %s2336_s12, %s2950_s2 }
  0x23   :  { %p2342_p13 = pnand %p2340_p12, %p2337_p11 }
  0x25   :  { %2345 = shalt.err (!%p2342_p13)
}
  0x26   :  { %s2346_s17 = scalar_lea.vmem %s33_s9, 2048  ;;  %p2351_p1 = scmp.lt.s32.totalorder %s33_s9, %s33_s9 }
  0x27   :  { %p2347_p0 = scmp.ne.s32.totalorder %s33_s9, %s2346_s17  ;;  %p2352_p2 = scmp.lt.s32.totalorder %s2346_s17, %s2346_s17 }
  0x29   :  { %p2353_p3 = por %p2352_p2, %p2351_p1 }
  0x2b   :  { %p2354_p4 = pnand %p2353_p3, %p2347_p0 }
  0x2d   :  { %2357 = shalt.err (!%p2354_p4)
}
  0x2e   :  { %38 = dma.hbm_to_vmem [thread:$0]  %s2950_s2, 2048, %s33_s9, [#allocation9], %s2390_s4, %s2390_s4, %s2391_s5  }
  0x2f   :  { %2382 = dma.done.wait [#allocation6], 2304  }
  0x30   :  { %2383 = vsyncadd [#allocation6], 4294964992 }
  0x31   :  { %2384 = dma.done.wait [#allocation9], 2048  }
  0x32   :  { %2385 = vsyncadd [#allocation9], 4294965248  ;;  %v77_v0 = vlaneseq  ;;  %s2456_s19 = sld [smem:[#allocation4]]  ;;  %s2458_s20 = sld [smem:[#allocation4 + $0x1]]  ;;  %vm68_vm0 = vcmask 130048   ;;  %v60_v4 = vld [vmem:[#allocation8] sm:$0xff] }
  0x33   :  { %s2464_s2 = sld [smem:[#allocation4 + $0x2]]  ;;  %s2466_s21 = sld [smem:[#allocation4 + $0x3]]  ;;  %v61_v5 = vld [vmem:[#allocation8 + $0x8] sm:$0xff]  ;;  %v62_v6 = vld [vmem:[#allocation8 + $0x10] sm:$0xff]  ;;  %vm93_vm1 = vcmask 125952   ;;  %v63_v7 = vld [vmem:[#allocation8 + $0x18] sm:$0xff] }
  0x34   :  { %v78_v1 = vshrl.u32 %v77_v0, 7  ;;  %v64_v8 = vld [vmem:[#allocation8 + $0x20] sm:$0xff]  ;;  %v65_v9 = vld [vmem:[#allocation8 + $0x28] sm:$0xff]  ;;  %69 = vst.msk [vmem:[#allocation2 + $0x4] sm:$0xff] %vm68_vm0, %v60_v4  ;;  %70 = vst.msk [vmem:[#allocation2 + $0xc] sm:$0xff] %vm68_vm0, %v61_v5  ;;  %s2393_s6 = smov [#allocation10]  }
  0x35   :  { %71 = vst.msk [vmem:[#allocation2 + $0x1c] sm:$0xff] %vm68_vm0, %v62_v6  ;;  %v66_v13 = vld [vmem:[#allocation8 + $0x30] sm:$0xff]  ;;  %v67_v14 = vld [vmem:[#allocation8 + $0x38] sm:$0xff]  ;;  %72 = vst.msk [vmem:[#allocation2 + $0x24] sm:$0xff] %vm68_vm0, %v63_v7  ;;  %s1806_s7 = sshll.u32 %s2393_s6, 4  ;;  %s1807_s7 = int_to_ptr.vmem [resolvable:$true] %s1806_s7 }
  0x36   :  { %v2460_v2 = vsub.s32 0, %v78_v1  ;;  %v2462_v3 = vsub.s32 7, %v78_v1  ;;  %73 = vst.msk [vmem:[#allocation2 + $0x34] sm:$0xff] %vm68_vm0, %v64_v8  ;;  %74 = vst.msk [vmem:[#allocation2 + $0x3c] sm:$0xff] %vm68_vm0, %v65_v9  ;;  %v2507_v20 = vld [vmem:[#allocation8 + $0x40] sm:$0xff]  ;;  %v2509_v21 = vld [vmem:[#allocation8 + $0x48] sm:$0xff]  ;;  %p2363_p0 = scmp.lt.s32.totalorder %s1807_s7, %s1807_s7 }
  0x37   :  { %75 = vst.msk [vmem:[#allocation2 + $0x4c] sm:$0xff] %vm68_vm0, %v66_v13  ;;  %76 = vst.msk [vmem:[#allocation2 + $0x54] sm:$0xff] %vm68_vm0, %v67_v14  ;;  %v2511_v22 = vld [vmem:[#allocation8 + $0x50] sm:$0xff]  ;;  %v2513_v23 = vld [vmem:[#allocation8 + $0x58] sm:$0xff]  ;;  %s2358_s8 = scalar_lea.vmem %s1807_s7, 2048 }
  0x38   :  { %p50_p5 = scmp.gt.s32.totalorder %s2456_s19, 0  ;;  %p1825_p6 = scmp.lt.s32.totalorder %s2456_s19, 8  ;;  %v80_v10 = vrot.slane %v60_v4, %v2460_v2  ;;  %v84_v11 = vrot.slane %v62_v6, %v2460_v2  ;;  %v101_v12 = vrot.slane %v61_v5, %v2462_v3  ;;  %v88_v15 = vrot.slane %v64_v8, %v2460_v2  ;;  %v2515_v24 = vld [vmem:[#allocation8 + $0x60] sm:$0xff]  ;;  %v2518_v27 = vld [vmem:[#allocation8 + $0x68] sm:$0xff]  ;;  %v2522_v30 = vld [vmem:[#allocation8 + $0x70] sm:$0xff] }
  0x39   :  { %p56_p7 = scmp.gt.s32.totalorder %s2458_s20, 0  ;;  %p1831_p8 = scmp.lt.s32.totalorder %s2458_s20, 8  ;;  %v105_v16 = vrot.slane %v63_v7, %v2462_v3  ;;  %v109_v17 = vrot.slane %v65_v9, %v2462_v3  ;;  %v92_v18 = vrot.slane %v66_v13, %v2460_v2  ;;  %v113_v19 = vrot.slane %v67_v14, %v2462_v3  ;;  %v2524_v31 = vld [vmem:[#allocation8 + $0x78] sm:$0xff] }
  0x3a   :  { %s51_s22 = scalar_select %p50_p5, %s2456_s19, 0  ;;  %94 = vst.msk [vmem:[#allocation2] sm:$0xf] %vm93_vm1, %v80_v10  ;;  %95 = vst.msk [vmem:[#allocation2 + $0x18] sm:$0xf] %vm93_vm1, %v84_v11  ;;  %v958_v32 = vrot.slane %v2507_v20, %v2460_v2  ;;  %v962_v33 = vrot.slane %v2511_v22, %v2460_v2  ;;  %v978_v34 = vrot.slane %v2509_v21, %v2462_v3 }
  0x3b   :  { %s57_s23 = scalar_select %p56_p7, %s2458_s20, 0  ;;  %114 = vst.msk [vmem:[#allocation2 + $0x14] sm:$0xf] %vm93_vm1, %v101_v12  ;;  %96 = vst.msk [vmem:[#allocation2 + $0x30] sm:$0xf] %vm93_vm1, %v88_v15  ;;  %v982_v38 = vrot.slane %v2513_v23, %v2462_v3  ;;  %v966_v42 = vrot.slane %v2515_v24, %v2460_v2  ;;  %v970_v43 = vrot.slane %v2522_v30, %v2460_v2 }
  0x3c   :  { %s2961_s22 = smov (!%p1825_p6, %s51_s22), 8  ;;  %115 = vst.msk [vmem:[#allocation2 + $0x2c] sm:$0xf] %vm93_vm1, %v105_v16  ;;  %116 = vst.msk [vmem:[#allocation2 + $0x44] sm:$0xf] %vm93_vm1, %v109_v17  ;;  %p928_p9 = scmp.gt.s32.totalorder %s2464_s2, 0  ;;  %v986_v44 = vrot.slane %v2518_v27, %v2462_v3  ;;  %v990_v45 = vrot.slane %v2524_v31, %v2462_v3 }
  0x3d   :  { %s2963_s23 = smov (!%p1831_p8, %s57_s23), 8  ;;  %97 = vst.msk [vmem:[#allocation2 + $0x48] sm:$0xf] %vm93_vm1, %v92_v18  ;;  %117 = vst.msk [vmem:[#allocation2 + $0x5c] sm:$0xf] %vm93_vm1, %v113_v19  ;;  %s1836_s24 = sshll.u32 %s2961_s22, 4 }
  0x3e   :  { %s128_s25 = scalar_lea.vmem [#allocation5], %s1836_s24  ;;  %p1838_p10 = scmp.lt.s32.totalorder %s2464_s2, 8 }
  0x3f   :  { %v129_v25 = vld [vmem:[%s128_s25] sm:$0xff]  ;;  %v130_v26 = vld [vmem:[%s128_s25 + $0x8] sm:$0xff]  ;;  %s929_s26 = scalar_select %p928_p9, %s2464_s2, 0 }
  0x40   :  { %v156_v28 = vand.u32 4294901760, %v129_v25  ;;  %v159_v29 = vand.u32 4294901760, %v130_v26  ;;  %p934_p11 = scmp.gt.s32.totalorder %s2466_s21, 0  ;;  %p1844_p12 = scmp.lt.s32.totalorder %s2466_s21, 8 }
  0x41   :  { %s2965_s26 = smov (!%p1838_p10, %s929_s26), 8  ;;  %s2541_s27 = scalar_lea.vmem [#allocation2], %s2963_s23 }
  0x42   :  { %v2533_v35 = vpack.c.bf16 %v159_v29, %v156_v28  ;;  %v2535_v36 = vsub.f32 %v129_v25, %v156_v28  ;;  %v2537_v37 = vsub.f32 %v130_v26, %v159_v29  ;;  %s2549_s28 = scalar_select %p934_p11, %s2466_s21, 0 }
  0x43   :  { %s1849_s29 = sshll.u32 %s2965_s26, 4  ;;  %p2359_p13 = scmp.ne.s32.totalorder %s1807_s7, %s2358_s8 }
  0x44   :  { %v119_v39 = vld [vmem:[%s2541_s27] sm:$0xff]  ;;  %v120_v40 = vld [vmem:[%s2541_s27 + $0x8] sm:$0xff]  ;;  %v121_v41 = vld [vmem:[%s2541_s27 + $0x18] sm:$0xff]  ;;  %2171 = vmatprep.subr.bf16.mxu0 %v2533_v35  ;;  %v2567_v51 = vpack.c.bf16 %v2537_v37, %v2535_v36  ;;  %s1005_s30 = scalar_lea.vmem [#allocation5], %s1849_s29  ;;  %v305_v61 = vand.u32 4294901760, %v2535_v36  ;;  %v312_v62 = vand.u32 4294901760, %v2537_v37  ;;  %p2364_p1 = scmp.lt.s32.totalorder %s2358_s8, %s2358_s8 }
  0x45   :  { %v132_v46 = vsel %vm68_vm0, %v119_v39, 0  ;;  %v135_v47 = vsel %vm68_vm0, %v120_v40, 0  ;;  %v138_v48 = vsel %vm68_vm0, %v121_v41, 0  ;;  %v122_v49 = vld [vmem:[%s2541_s27 + $0x20] sm:$0xff]  ;;  %v123_v50 = vld [vmem:[%s2541_s27 + $0x30] sm:$0xff]  ;;  %2173 = vmatpush3.bf16.msra.mxu0 %v2533_v35  ;;  %v2578_v56 = vld [vmem:[%s2541_s27 + $0x38] sm:$0xff] }
  0x46   :  { %v2570_v52 = vand.u32 4294901760, %v132_v46  ;;  %v2572_v53 = vand.u32 4294901760, %v135_v47  ;;  %v2574_v54 = vand.u32 4294901760, %v138_v48  ;;  %v141_v55 = vsel %vm68_vm0, %v122_v49, 0  ;;  %v1006_v57 = vld [vmem:[%s1005_s30] sm:$0xff]  ;;  %v1007_v58 = vld [vmem:[%s1005_s30 + $0x8] sm:$0xff]  ;;  %p2365_p2 = por %p2364_p1, %p2363_p0 }
  0x47   :  { %v2580_v59 = vand.u32 4294901760, %v141_v55  ;;  %v144_v60 = vsel %vm68_vm0, %v123_v50, 0  ;;  %v1033_v2 = vand.u32 4294901760, %v1006_v57  ;;  %v125_v3 = vld [vmem:[%s2541_s27 + $0x48] sm:$0xff]  ;;  %v126_v4 = vld [vmem:[%s2541_s27 + $0x50] sm:$0xff]  ;;  %v1036_v5 = vand.u32 4294901760, %v1007_v58 }
  0x48   :  { %v2586_v63 = vsub.f32 %v132_v46, %v2570_v52  ;;  %v2589_v0 = vsub.f32 %v135_v47, %v2572_v53  ;;  %v2592_v1 = vsub.f32 %v138_v48, %v2574_v54  ;;  %v2599_v7 = vand.u32 4294901760, %v144_v60  ;;  %s2967_s28 = smov (!%p1844_p12, %s2549_s28), 8  ;;  %947 = vst.msk [vmem:[#allocation2 + $0x4] sm:$0xff] %vm68_vm0, %v2507_v20  ;;  %948 = vst.msk [vmem:[#allocation2 + $0xc] sm:$0xff] %vm68_vm0, %v2509_v21  ;;  %p2366_p3 = pnand %p2365_p2, %p2359_p13 }
  0x49   :  { %v2597_v6 = vsub.f32 %v141_v55, %v2580_v59  ;;  %v306_v8 = vsub.f32 %v2535_v36, %v305_v61  ;;  %949 = vst.msk [vmem:[#allocation2 + $0x1c] sm:$0xff] %vm68_vm0, %v2511_v22  ;;  %950 = vst.msk [vmem:[#allocation2 + $0x24] sm:$0xff] %vm68_vm0, %v2513_v23  ;;  %v313_v12 = vsub.f32 %v2537_v37, %v312_v62  ;;  %s2670_s0 = scalar_lea.vmem [#allocation2], %s2967_s28  ;;  %v150_v39 = vsel %vm68_vm0, %v125_v3, 0 }
  0x4a   :  { %951 = vst.msk [vmem:[#allocation2 + $0x34] sm:$0xff] %vm68_vm0, %v2515_v24  ;;  %952 = vst.msk [vmem:[#allocation2 + $0x3c] sm:$0xff] %vm68_vm0, %v2518_v27  ;;  %v224_v9 = vand.u32 4294901760, %v2586_v63  ;;  %v234_v10 = vand.u32 4294901760, %v2589_v0  ;;  %v244_v11 = vand.u32 4294901760, %v2592_v1  ;;  %v2639_v13 = vpack.c.bf16 %v1036_v5, %v1033_v2 }
  0x4b   :  { %953 = vst.msk [vmem:[#allocation2 + $0x4c] sm:$0xff] %vm68_vm0, %v2522_v30  ;;  %954 = vst.msk [vmem:[#allocation2 + $0x54] sm:$0xff] %vm68_vm0, %v2524_v31  ;;  %v254_v14 = vand.u32 4294901760, %v2597_v6  ;;  %v2643_v15 = vsub.f32 %v144_v60, %v2599_v7  ;;  %v307_v16 = vand.u32 4294901760, %v306_v8  ;;  %v314_v20 = vand.u32 4294901760, %v313_v12 }
  0x4c   :  { %971 = vst.msk [vmem:[#allocation2] sm:$0xf] %vm93_vm1, %v958_v32  ;;  %972 = vst.msk [vmem:[#allocation2 + $0x18] sm:$0xf] %vm93_vm1, %v962_v33  ;;  %v225_v17 = vsub.f32 %v2586_v63, %v224_v9  ;;  %v235_v18 = vsub.f32 %v2589_v0, %v234_v10  ;;  %v245_v19 = vsub.f32 %v2592_v1, %v244_v11  ;;  %2195 = vmatprep.subr.bf16.mxu1 %v2639_v13 }
  0x4d   :  { %973 = vst.msk [vmem:[#allocation2 + $0x30] sm:$0xf] %vm93_vm1, %v966_v42  ;;  %974 = vst.msk [vmem:[#allocation2 + $0x48] sm:$0xf] %vm93_vm1, %v970_v43  ;;  %v255_v21 = vsub.f32 %v2597_v6, %v254_v14  ;;  %v264_v22 = vand.u32 4294901760, %v2643_v15  ;;  %v2659_v23 = vsub.f32 %v1006_v57, %v1033_v2  ;;  %v2661_v24 = vsub.f32 %v1007_v58, %v1036_v5 }
  0x4e   :  { %991 = vst.msk [vmem:[#allocation2 + $0x14] sm:$0xf] %vm93_vm1, %v978_v34  ;;  %992 = vst.msk [vmem:[#allocation2 + $0x2c] sm:$0xf] %vm93_vm1, %v982_v38  ;;  %v226_v25 = vand.u32 4294901760, %v225_v17  ;;  %v236_v26 = vand.u32 4294901760, %v235_v18  ;;  %2197 = vmatpush3.bf16.msra.mxu1 %v2639_v13  ;;  %v2174_v28 = vpack.c.bf16 %v314_v20, %v307_v16 }
  0x4f   :  { %993 = vst.msk [vmem:[#allocation2 + $0x44] sm:$0xf] %vm93_vm1, %v986_v44  ;;  %994 = vst.msk [vmem:[#allocation2 + $0x5c] sm:$0xf] %vm93_vm1, %v990_v45  ;;  %v246_v27 = vand.u32 4294901760, %v245_v19  ;;  %v256_v29 = vand.u32 4294901760, %v255_v21  ;;  %v265_v30 = vsub.f32 %v2643_v15, %v264_v22  ;;  %v2681_v42 = vpack.c.bf16 %v2661_v24, %v2659_v23 }
  0x50   :  { %v1182_v31 = vand.u32 4294901760, %v2659_v23  ;;  %v1189_v32 = vand.u32 4294901760, %v2661_v24  ;;  %1982 = vmatprep.mubr.f32.mxu0 %v226_v25  ;;  %2175 = vmatprep.subr.bf16.mxu0 %v2174_v28  ;;  %v147_v34 = vsel %vm68_vm0, %v2578_v56, 0  ;;  %v153_v41 = vsel %vm68_vm0, %v126_v4, 0 }
  0x51   :  { %1983 = vmatmul.mubr.f32.vlgmr.msra.gmra.mrb[0].mxu0 %v236_v26  ;;  %v266_v43 = vand.u32 4294901760, %v265_v30  ;;  %v2692_v48 = vand.u32 4294901760, %v147_v34  ;;  %v2695_v50 = vand.u32 4294901760, %v150_v39  ;;  %v2717_v17 = vand.u32 4294901760, %v153_v41 }
  0x52   :  { %v1183_v45 = vsub.f32 %v2659_v23, %v1182_v31  ;;  %v1190_v46 = vsub.f32 %v2661_v24, %v1189_v32  ;;  %1985 = vmatprep.mubr.f32.mxu0 %v246_v27  ;;  %2177 = vmatpush3.bf16.msra.mxu0 %v2174_v28  ;;  %v2210_v36 = vpack.c.bf16 %v1189_v32, %v1182_v31 }
  0x53   :  { %2179 = vmatprep.subr.bf16.mxu0 %v2567_v51  ;;  %v2706_v3 = vsub.f32 %v147_v34, %v2692_v48  ;;  %v2709_v4 = vsub.f32 %v150_v39, %v2695_v50  ;;  %v2728_v27 = vsub.f32 %v153_v41, %v2717_v17 }
  0x54   :  { %v1184_v56 = vand.u32 4294901760, %v1183_v45  ;;  %v1191_v57 = vand.u32 4294901760, %v1190_v46 }
  0x55   :  { %1986 = vmatmul.mubr.f32.gmra.mrb[2].mxu0 %v256_v29  ;;  %v274_v20 = vand.u32 4294901760, %v2706_v3  ;;  %v2953_v21 = vand.u32 4294901760, %v2709_v4  ;;  %v2956_v37 = vand.u32 4294901760, %v2709_v4 }
  0x56   :  { %v996_v33 = vld [vmem:[%s2670_s0] sm:$0xff]  ;;  %v997_v38 = vld [vmem:[%s2670_s0 + $0x8] sm:$0xff]  ;;  %v998_v40 = vld [vmem:[%s2670_s0 + $0x18] sm:$0xff]  ;;  %v2198_v12 = vpack.c.bf16 %v1191_v57, %v1184_v56  ;;  %1988 = vmatprep.mubr.f32.mxu0 %v266_v43 }
  0x57   :  { %v1009_v44 = vsel %vm68_vm0, %v996_v33, 0  ;;  %v1012_v49 = vsel %vm68_vm0, %v997_v38, 0  ;;  %v999_v55 = vld [vmem:[%s2670_s0 + $0x20] sm:$0xff]  ;;  %v1015_v60 = vsel %vm68_vm0, %v998_v40, 0  ;;  %v1000_v8 = vld [vmem:[%s2670_s0 + $0x30] sm:$0xff]  ;;  %v275_v33 = vsub.f32 %v2706_v3, %v274_v20  ;;  %v1002_v45 = vld [vmem:[%s2670_s0 + $0x48] sm:$0xff] }
  0x58   :  { %v2690_v47 = vand.u32 4294901760, %v1009_v44  ;;  %v2698_v58 = vand.u32 4294901760, %v1012_v49  ;;  %v2711_v5 = vand.u32 4294901760, %v1015_v60  ;;  %v1018_v18 = vsel %vm68_vm0, %v999_v55, 0  ;;  %2199 = vmatprep.subr.bf16.mxu1 %v2198_v12  ;;  %v1003_v46 = vld [vmem:[%s2670_s0 + $0x50] sm:$0xff] }
  0x59   :  { %v2730_v28 = vand.u32 4294901760, %v1018_v18  ;;  %v1021_v29 = vsel %vm68_vm0, %v1000_v8, 0  ;;  %v285_v34 = vsub.f32 %v2709_v4, %v2953_v21  ;;  %v2954_v40 = vand.u32 4294901760, %v2728_v27 }
  0x5a   :  { %v2703_v2 = vsub.f32 %v1009_v44, %v2690_v47  ;;  %v2715_v16 = vsub.f32 %v1012_v49, %v2698_v58  ;;  %v2724_v25 = vsub.f32 %v1015_v60, %v2711_v5  ;;  %v2750_v43 = vand.u32 4294901760, %v1021_v29  ;;  %v1001_v44 = vld [vmem:[%s2670_s0 + $0x38] sm:$0xff] }
  0x5b   :  { %v2748_v41 = vsub.f32 %v1018_v18, %v2730_v28  ;;  %v276_v55 = vand.u32 4294901760, %v275_v33  ;;  %v286_v56 = vand.u32 4294901760, %v285_v34  ;;  %v295_v8 = vsub.f32 %v2728_v27, %v2954_v40 }
  0x5c   :  { %v1101_v19 = vand.u32 4294901760, %v2703_v2  ;;  %v2952_v26 = vand.u32 4294901760, %v2715_v16  ;;  %v2955_v38 = vand.u32 4294901760, %v2724_v25  ;;  %v1027_v33 = vsel %vm68_vm0, %v1002_v45, 0 }
  0x5d   :  { %v1131_v18 = vand.u32 4294901760, %v2748_v41  ;;  %1989 = vmatmul.mubr.f32.gmra.mrb[4].mxu0 %v276_v55  ;;  %v1030_v34 = vsel %vm68_vm0, %v1003_v46, 0 }
  0x5e   :  { %v1102_v30 = vsub.f32 %v2703_v2, %v1101_v19  ;;  %v1112_v39 = vsub.f32 %v2715_v16, %v2952_v26  ;;  %v1122_v57 = vsub.f32 %v2724_v25, %v2955_v38  ;;  %v2763_v26 = vsub.f32 %v1021_v29, %v2750_v43  ;;  %1991 = vmatprep.mubr.f32.mxu0 %v286_v56 }
  0x5f   :  { %v1132_v40 = vsub.f32 %v2748_v41, %v1131_v18 }
  0x60   :  { %v1103_v49 = vand.u32 4294901760, %v1102_v30  ;;  %v1113_v60 = vand.u32 4294901760, %v1112_v39  ;;  %v1123_v21 = vand.u32 4294901760, %v1122_v57  ;;  %v1024_v30 = vsel %vm68_vm0, %v1001_v44, 0 }
  0x61   :  { %v296_v39 = vand.u32 4294901760, %v295_v8  ;;  %v1141_v38 = vand.u32 4294901760, %v2763_v26  ;;  %v2772_v29 = vand.u32 4294901760, %v1024_v30  ;;  %v2776_v44 = vand.u32 4294901760, %v1030_v34 }
  0x62   :  { %2078 = vmatprep.mubr.f32.mxu1 %v1103_v49  ;;  %v2774_v49 = vand.u32 4294901760, %v1027_v33  ;;  %v1133_v45 = vand.u32 4294901760, %v1132_v40 }
  0x63   :  { %2079 = vmatmul.mubr.f32.vlgmr.msra.gmra.mrb[0].mxu1 %v1113_v60  ;;  %v1142_v46 = vsub.f32 %v2763_v26, %v1141_v38  ;;  %v2782_v55 = vsub.f32 %v1024_v30, %v2772_v29  ;;  %1992 = vmatmul.mubr.f32.gmra.mrb[6].mxu0 %v296_v39 }
  0x64   :  { %2201 = vmatpush3.bf16.msra.mxu1 %v2198_v12  ;;  %2081 = vmatprep.mubr.f32.mxu1 %v1123_v21  ;;  %v2786_v56 = vsub.f32 %v1027_v33, %v2774_v49  ;;  %v2789_v12 = vsub.f32 %v1030_v34, %v2776_v44 }
  0x65   :  { %2203 = vmatprep.subr.bf16.mxu1 %v2681_v42  ;;  %1998 = vmatprep.mubr.f32.mxu0 %v2570_v52  ;;  %v1143_v21 = vand.u32 4294901760, %v1142_v46  ;;  %v1151_v40 = vand.u32 4294901760, %v2782_v55 }
  0x66   :  { %v1161_v57 = vand.u32 4294901760, %v2786_v56  ;;  %v1171_v60 = vand.u32 4294901760, %v2789_v12 }
  0x67   :  { %2082 = vmatmul.mubr.f32.gmra.mrb[2].mxu1 %v1133_v45  ;;  %v1152_v8 = vsub.f32 %v2782_v55, %v1151_v40  ;;  %1999 = vmatmul.mubr.f32.vlgmr.msra.gmra.mrb[0].mxu0 %v2572_v53 }
  0x68   :  { %2084 = vmatprep.mubr.f32.mxu1 %v1143_v21  ;;  %v1162_v30 = vsub.f32 %v2786_v56, %v1161_v57  ;;  %v1172_v33 = vsub.f32 %v2789_v12, %v1171_v60  ;;  %2001 = vmatprep.mubr.f32.mxu0 %v2574_v54 }
  0x69   :  { %v1153_v34 = vand.u32 4294901760, %v1152_v8  ;;  %2181 = vmatpush3.bf16.msra.mxu0 %v2567_v51  ;;  %v2186_v51 = vpack.c.bf16 %v312_v62, %v305_v61  ;;  %v2957_v61 = vand.u32 4294901760, %v2715_v16  ;;  %v2958_v62 = vand.u32 4294901760, %v2724_v25 }
  0x6a   :  { %v1163_v39 = vand.u32 4294901760, %v1162_v30  ;;  %2183 = vmatprep.subr.bf16.mxu0 %v2533_v35  ;;  %v1173_v45 = vand.u32 4294901760, %v1172_v33 }
  0x6b   :  { %2085 = vmatmul.mubr.f32.gmra.mrb[4].mxu1 %v1153_v34  ;;  %2002 = vmatmul.mubr.f32.gmra.mrb[2].mxu0 %v2580_v59 }
  0x6c   :  { %2087 = vmatprep.mubr.f32.mxu1 %v1163_v39  ;;  %2004 = vmatprep.mubr.f32.mxu0 %v2599_v7 }
  0x6f   :  { %2088 = vmatmul.mubr.f32.gmra.mrb[6].mxu1 %v1173_v45  ;;  %2005 = vmatmul.mubr.f32.gmra.mrb[4].mxu0 %v2692_v48 }
  0x70   :  { %2094 = vmatprep.mubr.f32.mxu1 %v2690_v47  ;;  %2007 = vmatprep.mubr.f32.mxu0 %v2695_v50 }
  0x73   :  { %2095 = vmatmul.mubr.f32.vlgmr.msra.gmra.mrb[0].mxu1 %v2698_v58  ;;  %2008 = vmatmul.mubr.f32.gmra.mrb[6].mxu0 %v2717_v17 }
  0x74   :  { %2205 = vmatpush3.bf16.msra.mxu1 %v2681_v42  ;;  %2097 = vmatprep.mubr.f32.mxu1 %v2711_v5 }
  0x75   :  { %2207 = vmatprep.subr.bf16.mxu1 %v2639_v13  ;;  %2014 = vmatprep.mubr.f32.mxu0 %v2586_v63  ;;  %v2959_v63 = vand.u32 4294901760, %v2728_v27 }
  0x77   :  { %2098 = vmatmul.mubr.f32.gmra.mrb[2].mxu1 %v2730_v28  ;;  %2015 = vmatmul.mubr.f32.vlgmr.msra.gmra.mrb[0].mxu0 %v2589_v0 }
  0x78   :  { %2100 = vmatprep.mubr.f32.mxu1 %v2750_v43  ;;  %2017 = vmatprep.mubr.f32.mxu0 %v2592_v1 }
  0x79   :  { %2185 = vmatpush3.bf16.msra.mxu0 %v2533_v35 }
  0x7a   :  { %2187 = vmatprep.subr.bf16.mxu0 %v2186_v51 }
  0x7b   :  { %2101 = vmatmul.mubr.f32.gmra.mrb[4].mxu1 %v2772_v29  ;;  %2018 = vmatmul.mubr.f32.gmra.mrb[2].mxu0 %v2597_v6 }
  0x7c   :  { %2103 = vmatprep.mubr.f32.mxu1 %v2774_v49  ;;  %2020 = vmatprep.mubr.f32.mxu0 %v2643_v15 }
  0x7f   :  { %2104 = vmatmul.mubr.f32.gmra.mrb[6].mxu1 %v2776_v44  ;;  %2021 = vmatmul.mubr.f32.gmra.mrb[4].mxu0 %v2706_v3 }
  0x80   :  { %2110 = vmatprep.mubr.f32.mxu1 %v2703_v2  ;;  %2023 = vmatprep.mubr.f32.mxu0 %v2709_v4 }
  0x83   :  { %2111 = vmatmul.mubr.f32.vlgmr.msra.gmra.mrb[0].mxu1 %v2715_v16  ;;  %2024 = vmatmul.mubr.f32.gmra.mrb[6].mxu0 %v2728_v27 }
  0x84   :  { %2209 = vmatpush3.bf16.msra.mxu1 %v2639_v13  ;;  %2113 = vmatprep.mubr.f32.mxu1 %v2724_v25 }
  0x85   :  { %2211 = vmatprep.subr.bf16.mxu1 %v2210_v36  ;;  %2030 = vmatprep.mubr.f32.mxu0 %v224_v9 }
  0x87   :  { %2114 = vmatmul.mubr.f32.gmra.mrb[2].mxu1 %v2748_v41  ;;  %2031 = vmatmul.mubr.f32.vlgmr.msra.gmra.mrb[0].mxu0 %v234_v10 }
  0x88   :  { %2116 = vmatprep.mubr.f32.mxu1 %v2763_v26  ;;  %2033 = vmatprep.mubr.f32.mxu0 %v244_v11 }
  0x89   :  { %2189 = vmatpush3.bf16.msra.mxu0 %v2186_v51 }
  0x8a   :  { %2191 = vmatprep.subr.bf16.mxu0 %v2533_v35 }
  0x8b   :  { %2117 = vmatmul.mubr.f32.gmra.mrb[4].mxu1 %v2782_v55  ;;  %2034 = vmatmul.mubr.f32.gmra.mrb[2].mxu0 %v254_v14 }
  0x8c   :  { %2119 = vmatprep.mubr.f32.mxu1 %v2786_v56  ;;  %2036 = vmatprep.mubr.f32.mxu0 %v264_v22 }
  0x8f   :  { %2120 = vmatmul.mubr.f32.gmra.mrb[6].mxu1 %v2789_v12  ;;  %2037 = vmatmul.mubr.f32.gmra.mrb[4].mxu0 %v274_v20 }
  0x90   :  { %2126 = vmatprep.mubr.f32.mxu1 %v1101_v19  ;;  %2039 = vmatprep.mubr.f32.mxu0 %v2956_v37 }
  0x93   :  { %2127 = vmatmul.mubr.f32.vlgmr.msra.gmra.mrb[0].mxu1 %v2957_v61  ;;  %2040 = vmatmul.mubr.f32.gmra.mrb[6].mxu0 %v2959_v63 }
  0x94   :  { %2213 = vmatpush3.bf16.msra.mxu1 %v2210_v36  ;;  %2129 = vmatprep.mubr.f32.mxu1 %v2958_v62 }
  0x95   :  { %2215 = vmatprep.subr.bf16.mxu1 %v2639_v13  ;;  %2046 = vmatprep.mubr.f32.mxu0 %v2570_v52 }
  0x97   :  { %2130 = vmatmul.mubr.f32.gmra.mrb[2].mxu1 %v1131_v18  ;;  %2047 = vmatmul.mubr.f32.vlgmr.msra.gmra.mrb[0].mxu0 %v2572_v53 }
  0x98   :  { %2132 = vmatprep.mubr.f32.mxu1 %v1141_v38  ;;  %2049 = vmatprep.mubr.f32.mxu0 %v2574_v54 }
  0x99   :  { %2193 = vmatpush3.bf16.msra.mxu0 %v2533_v35 }
  0x9b   :  { %2133 = vmatmul.mubr.f32.gmra.mrb[4].mxu1 %v1151_v40  ;;  %2050 = vmatmul.mubr.f32.gmra.mrb[2].mxu0 %v2580_v59 }
  0x9c   :  { %2135 = vmatprep.mubr.f32.mxu1 %v1161_v57  ;;  %2052 = vmatprep.mubr.f32.mxu0 %v2599_v7 }
  0x9f   :  { %2136 = vmatmul.mubr.f32.gmra.mrb[6].mxu1 %v1171_v60  ;;  %2053 = vmatmul.mubr.f32.gmra.mrb[4].mxu0 %v2692_v48 }
  0xa0   :  { %2142 = vmatprep.mubr.f32.mxu1 %v2690_v47  ;;  %2055 = vmatprep.mubr.f32.mxu0 %v2695_v50 }
  0xa3   :  { %2143 = vmatmul.mubr.f32.vlgmr.msra.gmra.mrb[0].mxu1 %v2698_v58  ;;  %2056 = vmatmul.mubr.f32.gmra.mrb[6].mxu0 %v2717_v17 }
  0xa4   :  { %2217 = vmatpush3.bf16.msra.mxu1 %v2639_v13  ;;  %2145 = vmatprep.mubr.f32.mxu1 %v2711_v5 }
  0xa5   :  { %2062 = vmatprep.mubr.f32.mxu0 %v2570_v52 }
  0xa7   :  { %2146 = vmatmul.mubr.f32.gmra.mrb[2].mxu1 %v2730_v28  ;;  %2063 = vmatmul.mubr.f32.vlgmr.msra.gmra.mrb[0].mxu0 %v2572_v53 }
  0xa8   :  { %2148 = vmatprep.mubr.f32.mxu1 %v2750_v43  ;;  %2065 = vmatprep.mubr.f32.mxu0 %v2574_v54 }
  0xab   :  { %2149 = vmatmul.mubr.f32.gmra.mrb[4].mxu1 %v2772_v29  ;;  %2066 = vmatmul.mubr.f32.gmra.mrb[2].mxu0 %v2580_v59 }
  0xac   :  { %2151 = vmatprep.mubr.f32.mxu1 %v2774_v49  ;;  %2068 = vmatprep.mubr.f32.mxu0 %v2599_v7 }
  0xaf   :  { %2152 = vmatmul.mubr.f32.gmra.mrb[6].mxu1 %v2776_v44  ;;  %2069 = vmatmul.mubr.f32.gmra.mrb[4].mxu0 %v2692_v48 }
  0xb0   :  { %2158 = vmatprep.mubr.f32.mxu1 %v2690_v47  ;;  %2071 = vmatprep.mubr.f32.mxu0 %v2695_v50 }
  0xb3   :  { %2159 = vmatmul.mubr.f32.vlgmr.msra.gmra.mrb[0].mxu1 %v2698_v58  ;;  %2072 = vmatmul.mubr.f32.gmra.mrb[6].mxu0 %v2717_v17 }
  0xb4   :  { %2161 = vmatprep.mubr.f32.mxu1 %v2711_v5 }
  0xb7   :  { %2162 = vmatmul.mubr.f32.gmra.mrb[2].mxu1 %v2730_v28 }
  0xb8   :  { %2164 = vmatprep.mubr.f32.mxu1 %v2750_v43 }
  0xbb   :  { %2165 = vmatmul.mubr.f32.gmra.mrb[4].mxu1 %v2772_v29 }
  0xbc   :  { %2167 = vmatprep.mubr.f32.mxu1 %v2774_v49 }
  0xbf   :  { %2168 = vmatmul.mubr.f32.gmra.mrb[6].mxu1 %v2776_v44 }
 0x17a   :  { %v2064_v35 = vpop.f32.mrb[0].mxu0 }
 0x17b   :  { %916 = vst.msk [vmem:[#allocation10 + $0x8] sm:$0xff] %vm68_vm0, %v2064_v35  ;;  %v869_v52 = vpop.f32.mrb[1].mxu0 }
 0x17c   :  { %915 = vst.msk [vmem:[#allocation10] sm:$0xff] %vm68_vm0, %v869_v52 }
 0x17e   :  { %v2067_v53 = vpop.f32.mrb[2].mxu0 }
 0x17f   :  { %918 = vst.msk [vmem:[#allocation10 + $0x18] sm:$0xff] %vm68_vm0, %v2067_v53  ;;  %v881_v54 = vpop.f32.mrb[3].mxu0 }
 0x180   :  { %917 = vst.msk [vmem:[#allocation10 + $0x10] sm:$0xff] %vm68_vm0, %v881_v54 }
 0x182   :  { %v2070_v59 = vpop.f32.mrb[4].mxu0 }
 0x183   :  { %920 = vst.msk [vmem:[#allocation10 + $0x28] sm:$0xff] %vm68_vm0, %v2070_v59  ;;  %v893_v0 = vpop.f32.mrb[5].mxu0 }
 0x184   :  { %919 = vst.msk [vmem:[#allocation10 + $0x20] sm:$0xff] %vm68_vm0, %v893_v0 }
 0x186   :  { %v2160_v1 = vpop.f32.mrb[0].mxu1  ;;  %v2073_v7 = vpop.f32.mrb[6].mxu0 }
 0x187   :  { %1794 = vst.msk [vmem:[#allocation10 + $0x48] sm:$0xff] %vm68_vm0, %v2160_v1  ;;  %v1746_v6 = vpop.f32.mrb[1].mxu1  ;;  %922 = vst.msk [vmem:[#allocation10 + $0x38] sm:$0xff] %vm68_vm0, %v2073_v7  ;;  %v905_v9 = vpop.f32.mrb[7].mxu0 }
 0x188   :  { %1793 = vst.msk [vmem:[#allocation10 + $0x40] sm:$0xff] %vm68_vm0, %v1746_v6  ;;  %921 = vst.msk [vmem:[#allocation10 + $0x30] sm:$0xff] %vm68_vm0, %v905_v9 }
 0x18a   :  { %v2163_v10 = vpop.f32.mrb[2].mxu1 }
 0x18b   :  { %1796 = vst.msk [vmem:[#allocation10 + $0x58] sm:$0xff] %vm68_vm0, %v2163_v10  ;;  %v1758_v11 = vpop.f32.mrb[3].mxu1 }
 0x18c   :  { %1795 = vst.msk [vmem:[#allocation10 + $0x50] sm:$0xff] %vm68_vm0, %v1758_v11 }
 0x18e   :  { %v2166_v13 = vpop.f32.mrb[4].mxu1 }
 0x18f   :  { %1798 = vst.msk [vmem:[#allocation10 + $0x68] sm:$0xff] %vm68_vm0, %v2166_v13  ;;  %v1770_v14 = vpop.f32.mrb[5].mxu1 }
 0x190   :  { %1797 = vst.msk [vmem:[#allocation10 + $0x60] sm:$0xff] %vm68_vm0, %v1770_v14 }
 0x192   :  { %v2169_v15 = vpop.f32.mrb[6].mxu1 }
 0x193   :  { %1800 = vst.msk [vmem:[#allocation10 + $0x78] sm:$0xff] %vm68_vm0, %v2169_v15  ;;  %v1782_v22 = vpop.f32.mrb[7].mxu1 }
 0x194   :  { %1799 = vst.msk [vmem:[#allocation10 + $0x70] sm:$0xff] %vm68_vm0, %v1782_v22 }
 0x195   :  { %2369 = shalt.err (!%p2366_p3)
}
 0x196   :  { %s2370_s11 = scalar_lea.hbm %s2951_s3, 2048 }
 0x197   :  { %p2371_p4 = scmp.ne.s32.totalorder %s2951_s3, %s2370_s11  ;;  %p2374_p5 = scmp.lt.u32.totalorder %s2370_s11, %s2951_s3 }
 0x199   :  { %p2376_p6 = pnand %p2374_p5, %p2371_p4 }
 0x19b   :  { %2379 = shalt.err (!%p2376_p6)
}
 0x19c   :  { %1812 = dma.vmem_to_hbm [thread:$0]  %s1807_s7, 2048, %s2951_s3, [#allocation7], %s2390_s4, %s2390_s4, %s2391_s5  }
 0x19d   :  { %2386 = dma.done.wait [#allocation7], 2048  }
 0x19e   :  { %2387 = vsyncadd [#allocation7], 4294965248 }
 0x19f   :  { %1816 = vsyncpa [#allocation6], 1 }
 0x1a0   :  { %1817 = vsyncpa [#allocation9], 1 }
 0x1a1   :  { %1818 = vsyncpa [#allocation7], 1 }

</bundles_post_ra>
